<compile_context>
chip_gen: v5e
topology: v5e:2x2
jax: 0.10.0
libtpu: 0.0.40
codegen_flags: <defaults>
</compile_context>

<pallas_src>
import math
import functools

import jax
import jax.numpy as jnp
from jax.experimental import pallas as pl
from jax.experimental.pallas import tpu as pltpu

_LANE = 128
_SEG_FLOOR_BYTES = 2048              # min contiguous bytes per (n, c) DMA segment
_MAX_BLOCK_BYTES = 16 * 1024 * 1024  # per-block ceiling on big-VMEM chips


def _round_up(v, m):
    return ((v + m - 1) // m) * m


def _vmem_capacity_bytes():
    """Best-effort VMEM capacity query; conservative (v7x per-TC) fallback."""
    try:
        info = pltpu.get_tpu_info()
        cap = getattr(info, "vmem_capacity_bytes", None)
        if cap:
            return int(cap)
    except Exception:
        pass
    return 64 * 1024 * 1024


def _pick_tiles(N, C, HW, itemsize, target_block_bytes):
    """Pick (nb_tile, hw_tile): block ~<= target bytes, DMA segments kept long."""
    per_lane_bytes = max(1, C * itemsize)
    tgt_lanes = (target_block_bytes // per_lane_bytes) // _LANE * _LANE
    # Keep each contiguous (n, c) HBM->VMEM segment >= ~2 KiB even for huge C.
    seg_floor = _round_up(max(1, _SEG_FLOOR_BYTES // itemsize), _LANE)
    lanes = max(_LANE, seg_floor, tgt_lanes)

    hw_tile = HW if HW <= lanes else lanes

    nb_tile = 1
    if hw_tile == HW:
        # Pack batch elements per step when a full-HW slab is tiny (amortize per-step
        # overhead), but keep >= 2 parallel grid units on the batch axis when N >= 2
        # so v7x's second TensorCore has work.
        max_nb = max(1, target_block_bytes // max(1, C * HW * itemsize))
        for cand in range(min(N, max_nb), 0, -1):
            if N % cand == 0 and (cand == 1 or N // cand >= 2):
                nb_tile = cand
                break
    return nb_tile, hw_tile


def _make_in_spec(block_shape, index_map, buffers):
    if buffers > 2:
        try:
            return pl.BlockSpec(block_shape, index_map,
                                pipeline_mode=pl.Buffered(buffers))
        except TypeError:       # older BlockSpec without pipeline_mode
            pass
    return pl.BlockSpec(block_shape, index_map)


def _conv_sigmoid(pooled, w):
    """k-tap Conv1d(1,1,k, pad=k//2, no bias) over channels + sigmoid (plain JAX)."""
    n, C = pooled.shape
    k = w.shape[0]
    pad = k // 2
    padded = jnp.pad(pooled, ((0, 0), (pad, pad)))
    y = sum(w[j] * padded[:, j:j + C] for j in range(k))
    return jax.nn.sigmoid(y)


def _eca_kernel(w_ref, x_ref, o_ref, acc_ref, *, k, hw_total, hw_tile,
                tiles_per_half, split, may_have_partial):
    # w_ref : (k,)               conv taps, scalar-prefetched into SMEM
    # x_ref : (nb, C, hw_tile)   streamed input slab (VMEM)
    # o_ref : split=False -> (nb, 1, C) attention weights (native dtype)
    #         split=True  -> (1, nb, C) raw per-half partial sums (f32)
    # acc_ref: (nb, C, 1) f32    running per-channel spatial sum (VMEM scratch)
    s = pl.program_id(1)
    last = pl.num_programs(1) - 1

    @pl.when(s == 0)
    def _init():
        acc_ref[...] = jnp.zeros_like(acc_ref)

    x = x_ref[...].astype(jnp.float32)                         # (nb, C, hw_tile)

    if split:
        tile_idx = pl.program_id(0) * tiles_per_half + s       # global spatial tile
    else:
        tile_idx = s

    if may_have_partial:
        start = tile_idx * hw_tile
        is_full = start + hw_tile <= hw_total

        @pl.when(is_full)
        def _add_full():                                       # hot path: no mask
            acc_ref[...] += jnp.sum(x, axis=-1, keepdims=True)

        @pl.when(jnp.logical_not(is_full))
        def _add_masked():                                     # tail / OOB tile only
            lane = jax.lax.broadcasted_iota(jnp.int32, x.shape, 2)
            xm = jnp.where(start + lane < hw_total, x, 0.0)
            acc_ref[...] += jnp.sum(xm, axis=-1, keepdims=True)
    else:
        acc_ref[...] += jnp.sum(x, axis=-1, keepdims=True)

    @pl.when(s == last)
    def _finalize():
        nb, C = acc_ref.shape[0], acc_ref.shape[1]
        if split:
            # Emit raw per-half partial sums; combine + conv + sigmoid in wrapper.
            o_ref[...] = acc_ref[...][:, :, 0].reshape(o_ref.shape).astype(o_ref.dtype)
        else:
            pooled = acc_ref[...][:, :, 0] * (1.0 / hw_total)   # (nb, C), C on lanes
            pad = k // 2
            if pad > 0:
                zeros = jnp.zeros((nb, pad), jnp.float32)
                padded = jnp.concatenate([zeros, pooled, zeros], axis=-1)
            else:
                padded = pooled
            conv = jnp.zeros((nb, C), jnp.float32)
            for j in range(k):                                  # k is tiny (3 or 5)
                conv = conv + w_ref[j] * padded[:, j:j + C]
            o_ref[...] = jax.nn.sigmoid(conv).reshape(nb, 1, C).astype(o_ref.dtype)


def eca_forward(x, weight, *, hw_tile=None, nb_tile=None):
    """ECA forward. x: (N, C, H, W); weight: (1, 1, k) Conv1d weight (no bias)."""
    N, C, H, W = x.shape
    HW = H * W
    k = weight.shape[-1]
    itemsize = jnp.dtype(x.dtype).itemsize

    # Per-generation sizing: block ~= min(16 MiB, VMEM/5), vmem_limit ~= 70% of VMEM.
    vmem_cap = _vmem_capacity_bytes()
    target_block = min(_MAX_BLOCK_BYTES, vmem_cap // 5)
    vmem_limit = min(int(vmem_cap * 0.70), 96 * 1024 * 1024)

    auto_nb, auto_hw = _pick_tiles(N, C, HW, itemsize, target_block)
    hw_tile = auto_hw if hw_tile is None else hw_tile
    nb_tile = auto_nb if nb_tile is None else nb_tile
    assert N % nb_tile == 0
    assert hw_tile == HW or hw_tile % _LANE == 0

    S = pl.cdiv(HW, hw_tile)        # number of spatial tiles
    NB = N // nb_tile               # number of batch blocks
    # Keep both v7x TensorCores fed when the batch axis gives < 2 parallel units.
    split = (NB < 2) and (S >= 2)

    x_flat = x.reshape(N, C, HW)                    # free reshape; native-dtype DMA
    w_flat = weight.reshape(k).astype(jnp.float32)

    if split:
        tiles_per_half = pl.cdiv(S, 2)
        grid = (2, tiles_per_half)
        may_partial = (HW % hw_tile != 0) or (2 * tiles_per_half != S)
        if 2 * tiles_per_half == S:
            in_index = lambda p, s, w: (0, 0, p * tiles_per_half + s)
        else:
            # Clamp the (possibly OOB) trailing tile of the second half; the kernel
            # masks it to zero against hw_total, so it contributes nothing.
            in_index = lambda p, s, w: (0, 0,
                                        jnp.minimum(p * tiles_per_half + s, S - 1))
        out_shape = jax.ShapeDtypeStruct((2, N, C), jnp.float32)
        out_spec = pl.BlockSpec((1, nb_tile, C), lambda p, s, w: (p, 0, 0))
    else:
        tiles_per_half = 0
        grid = (NB, S)
        may_partial = (HW % hw_tile != 0)
        in_index = lambda n, s, w: (n, 0, s)
        out_shape = jax.ShapeDtypeStruct((N, 1, C), x.dtype)
        out_spec = pl.BlockSpec((nb_tile, 1, C), lambda n, s, w: (n, 0, 0))

    in_block = (nb_tile, C, hw_tile)
    kern = functools.partial(_eca_kernel, k=k, hw_total=HW, hw_tile=hw_tile,
                             tiles_per_half=tiles_per_half, split=split,
                             may_have_partial=may_partial)

    out_itemsize = jnp.dtype(out_shape.dtype).itemsize
    cost = pl.CostEstimate(
        flops=N * C * HW + N * C * (2 * k + 1),
        transcendentals=N * C,
        bytes_accessed=(x_flat.size * itemsize + k * 4
                        + int(jnp.prod(jnp.array(out_shape.shape))) * out_itemsize),
    )

    def _run(buffers):
        return pl.pallas_call(
            kern,
            out_shape=out_shape,
            grid_spec=pltpu.PrefetchScalarGridSpec(
                num_scalar_prefetch=1,              # conv taps -> SMEM, loaded once
                grid=grid,
                in_specs=[_make_in_spec(in_block, in_index, buffers)],
                out_specs=out_spec,
                scratch_shapes=[pltpu.VMEM((nb_tile, C, 1), jnp.float32)],
            ),
            compiler_params=pltpu.CompilerParams(
                dimension_semantics=("parallel", "arbitrary"),
                vmem_limit_bytes=vmem_limit,
            ),
            cost_estimate=cost,
        )(w_flat, x_flat)

    want_buffers = 3 if grid[1] >= 3 else 2
    if want_buffers > 2:
        try:
            out = _run(want_buffers)
        except Exception:
            out = _run(2)       # fall back to default double-buffering
    else:
        out = _run(2)

    if split:
        pooled = out.sum(axis=0) * (1.0 / HW)                   # (N, C) f32
        att = _conv_sigmoid(pooled, w_flat).astype(x.dtype)     # tiny O(N*C*k) work
        return att.reshape(N, C, 1, 1)
    return out.reshape(N, C, 1, 1)


def eca_reference(x, weight):
    """Plain-JAX reference matching the PyTorch module."""
    N, C, H, W = x.shape
    k = weight.shape[-1]
    pooled = jnp.mean(x.astype(jnp.float32), axis=(2, 3))       # (N, C)
    w = weight.reshape(k).astype(jnp.float32)
    return _conv_sigmoid(pooled, w).reshape(N, C, 1, 1).astype(x.dtype)


if __name__ == "__main__":
    # Shapes consistent with the module: NCHW input, channels drive kernel size.
    N, C, H, W = 2, 16, 16, 16
    b_hyper, gamma = 1, 2
    t = int(abs((math.log(C, 2) + b_hyper) / gamma))
    k = t if t % 2 else t + 1                        # C=16 -> k=3

    key = jax.random.PRNGKey(0)
    kx, kw, kx2, kx3, kx4 = jax.random.split(key, 5)
    x = jax.random.normal(kx, (N, C, H, W), dtype=jnp.float32)
    # Deterministic synthetic Conv1d(1, 1, k, bias=False) weight, shape (1, 1, k).
    weight = jax.random.normal(kw, (1, 1, k), dtype=jnp.float32) * 0.5

    # 1) Default auto-tiled path (single full-HW block per batch element).
    out = jax.block_until_ready(eca_forward(x, weight))
    ref = eca_reference(x, weight)
    assert out.shape == (N, C, 1, 1), out.shape
    assert jnp.allclose(out, ref, atol=1e-5, rtol=1e-5), \
        float(jnp.max(jnp.abs(out - ref)))

    # 2) Streamed reduction with a masked partial tail tile (H*W = 130 on 128 lanes).
    x2 = jax.random.normal(kx2, (N, C, 10, 13), dtype=jnp.float32)
    out2 = jax.block_until_ready(eca_forward(x2, weight, hw_tile=_LANE))
    ref2 = eca_reference(x2, weight)
    assert jnp.allclose(out2, ref2, atol=1e-5, rtol=1e-5), \
        float(jnp.max(jnp.abs(out2 - ref2)))

    # 3) N=1: spatial-split path (leading parallel axis of 2), even tile count.
    x3 = jax.random.normal(kx3, (1, C, 16, 16), dtype=jnp.float32)
    out3 = jax.block_until_ready(eca_forward(x3, weight, hw_tile=_LANE))
    ref3 = eca_reference(x3, weight)
    assert jnp.allclose(out3, ref3, atol=1e-5, rtol=1e-5), \
        float(jnp.max(jnp.abs(out3 - ref3)))

    # 4) N=1 split path with odd tile count: clamped + fully-masked OOB tile
    #    and a masked partial tail tile (H*W = 300 on 128 lanes -> 3 tiles).
    x4 = jax.random.normal(kx4, (1, C, 15, 20), dtype=jnp.float32)
    out4 = jax.block_until_ready(eca_forward(x4, weight, hw_tile=_LANE))
    ref4 = eca_reference(x4, weight)
    assert jnp.allclose(out4, ref4, atol=1e-5, rtol=1e-5), \
        float(jnp.max(jnp.abs(out4 - ref4)))

    print("KERNEL_OK")
</pallas_src>

<mosaic_0001>
module attributes {stable_mosaic.version = 11 : i64} {
  func.func @_eca_kernel(%arg0: i32, %arg1: i32, %arg2: memref<3xf32, #tpu.memory_space<smem>>, %arg3: memref<1x16x256xf32, #tpu.memory_space<vmem>>, %arg4: memref<1x1x16xf32, #tpu.memory_space<vmem>>, %arg5: memref<1x16x1xf32, #tpu.memory_space<vmem>>) attributes {dimension_semantics = [#tpu.dimension_semantics<parallel>, #tpu.dimension_semantics<arbitrary>], iteration_bounds = array<i64: 2, 1>, scalar_prefetch = 1 : i64, scratch_operands = 1 : i64, tpu.core_type = #tpu.core_type<tc>, window_params = [{transform_indices = @transform_0, window_bounds = array<i64: 1, 16, 256>}, {transform_indices = @transform_1, window_bounds = array<i64: 1, 1, 16>}]} {
    %c0_i32 = arith.constant 0 : i32
    %0 = arith.cmpi eq, %arg1, %c0_i32 : i32
    %1 = arith.extui %0 : i1 to i32
    %c0_i32_0 = arith.constant 0 : i32
    %2 = arith.cmpi ne, %1, %c0_i32_0 : i32
    scf.if %2 {
      %cst_11 = arith.constant 0.000000e+00 : f32
      %12 = vector.broadcast %cst_11 : f32 to vector<1x16x1xf32>
      %c0_12 = arith.constant 0 : index
      %c0_13 = arith.constant 0 : index
      %c0_14 = arith.constant 0 : index
      %13 = vector.load %arg5[%c0_12, %c0_13, %c0_14] : memref<1x16x1xf32, #tpu.memory_space<vmem>>, vector<1x16x1xf32>
      tpu.vector_store %arg5[%c0_12, %c0_13, %c0_14], %12 {strides = array<i32>} : memref<1x16x1xf32, #tpu.memory_space<vmem>>, vector<1x16x1xf32>,
    } else {
    }
    %c0 = arith.constant 0 : index
    %c0_1 = arith.constant 0 : index
    %c0_2 = arith.constant 0 : index
    %3 = vector.load %arg3[%c0, %c0_1, %c0_2] : memref<1x16x256xf32, #tpu.memory_space<vmem>>, vector<1x16x256xf32>
    %c0_3 = arith.constant 0 : index
    %c0_4 = arith.constant 0 : index
    %c0_5 = arith.constant 0 : index
    %4 = vector.load %arg5[%c0_3, %c0_4, %c0_5] : memref<1x16x1xf32, #tpu.memory_space<vmem>>, vector<1x16x1xf32>
    %cst = arith.constant dense<0.000000e+00> : vector<1x16xf32>
    %5 = vector.multi_reduction <add>, %3, %cst [2] : vector<1x16x256xf32> to vector<1x16xf32>
    %6 = vector.shape_cast %5 : vector<1x16xf32> to vector<1x16x1xf32>
    %7 = arith.addf %4, %6 : vector<1x16x1xf32>
    %c0_6 = arith.constant 0 : index
    %c0_7 = arith.constant 0 : index
    %c0_8 = arith.constant 0 : index
    %8 = vector.load %arg5[%c0_6, %c0_7, %c0_8] : memref<1x16x1xf32, #tpu.memory_space<vmem>>, vector<1x16x1xf32>
    tpu.vector_store %arg5[%c0_6, %c0_7, %c0_8], %7 {strides = array<i32>} : memref<1x16x1xf32, #tpu.memory_space<vmem>>, vector<1x16x1xf32>,
    %c0_i32_9 = arith.constant 0 : i32
    %9 = arith.cmpi eq, %arg1, %c0_i32_9 : i32
    %10 = arith.extui %9 : i1 to i32
    %c0_i32_10 = arith.constant 0 : i32
    %11 = arith.cmpi ne, %10, %c0_i32_10 : i32
    scf.if %11 {
      %c0_11 = arith.constant 0 : index
      %c0_12 = arith.constant 0 : index
      %c0_13 = arith.constant 0 : index
      %12 = vector.load %arg5[%c0_11, %c0_12, %c0_13] : memref<1x16x1xf32, #tpu.memory_space<vmem>>, vector<1x16x1xf32>
      %13 = vector.shape_cast %12 : vector<1x16x1xf32> to vector<1x16xf32>
      %cst_14 = arith.constant 3.906250e-03 : f32
      %14 = vector.broadcast %cst_14 : f32 to vector<1x16xf32>
      %15 = arith.mulf %13, %14 : vector<1x16xf32>
      %cst_15 = arith.constant 0.000000e+00 : f32
      %16 = vector.broadcast %cst_15 : f32 to vector<1x1xf32>
      %17 = tpu.concatenate %16, %15, %16 in 1 : vector<1x1xf32>, vector<1x16xf32>, vector<1x1xf32> -> vector<1x18xf32>
      %cst_16 = arith.constant 0.000000e+00 : f32
      %18 = vector.broadcast %cst_16 : f32 to vector<1x16xf32>
      %c0_17 = arith.constant 0 : index
      %19 = memref.load %arg2[%c0_17] : memref<3xf32, #tpu.memory_space<smem>>
      %20 = vector.extract_strided_slice %17 {offsets = [0, 0], sizes = [1, 16], strides = [1, 1]} : vector<1x18xf32> to vector<1x16xf32>
      %21 = vector.broadcast %19 : f32 to vector<1x16xf32>
      %22 = arith.mulf %21, %20 : vector<1x16xf32>
      %23 = arith.addf %18, %22 : vector<1x16xf32>
      %c1 = arith.constant 1 : index
      %24 = memref.load %arg2[%c1] : memref<3xf32, #tpu.memory_space<smem>>
      %25 = vector.extract_strided_slice %17 {offsets = [0, 1], sizes = [1, 16], strides = [1, 1]} : vector<1x18xf32> to vector<1x16xf32>
      %26 = vector.broadcast %24 : f32 to vector<1x16xf32>
      %27 = arith.mulf %26, %25 : vector<1x16xf32>
      %28 = arith.addf %23, %27 : vector<1x16xf32>
      %c2 = arith.constant 2 : index
      %29 = memref.load %arg2[%c2] : memref<3xf32, #tpu.memory_space<smem>>
      %30 = vector.extract_strided_slice %17 {offsets = [0, 2], sizes = [1, 16], strides = [1, 1]} : vector<1x18xf32> to vector<1x16xf32>
      %31 = vector.broadcast %29 : f32 to vector<1x16xf32>
      %32 = arith.mulf %31, %30 : vector<1x16xf32>
      %33 = arith.addf %28, %32 : vector<1x16xf32>
      %34 = arith.negf %33 : vector<1x16xf32>
      %35 = math.exp %34 : vector<1x16xf32>
      %cst_18 = arith.constant 1.000000e+00 : f32
      %36 = vector.broadcast %cst_18 : f32 to vector<1x16xf32>
      %37 = arith.addf %36, %35 : vector<1x16xf32>
      %38 = arith.divf %36, %37 : vector<1x16xf32>
      %39 = vector.shape_cast %38 : vector<1x16xf32> to vector<1x1x16xf32>
      %c0_19 = arith.constant 0 : index
      %c0_20 = arith.constant 0 : index
      %c0_21 = arith.constant 0 : index
      %40 = vector.load %arg4[%c0_19, %c0_20, %c0_21] : memref<1x1x16xf32, #tpu.memory_space<vmem>>, vector<1x1x16xf32>
      tpu.vector_store %arg4[%c0_19, %c0_20, %c0_21], %39 {strides = array<i32>} : memref<1x1x16xf32, #tpu.memory_space<vmem>>, vector<1x1x16xf32>,
    } else {
    }
    return
  }
  func.func @transform_0(%arg0: i32, %arg1: i32, %arg2: memref<3xf32, #tpu.memory_space<smem>>) -> (i32, i32, i32) {
    %c0_i32 = arith.constant 0 : i32
    %c0_i32_0 = arith.constant 0 : i32
    return %arg0, %c0_i32, %arg1 : i32, i32, i32
  }
  func.func @transform_1(%arg0: i32, %arg1: i32, %arg2: memref<3xf32, #tpu.memory_space<smem>>) -> (i32, i32, i32) {
    %c0_i32 = arith.constant 0 : i32
    %c0_i32_0 = arith.constant 0 : i32
    %c0_i32_1 = arith.constant 0 : i32
    return %arg0, %c0_i32, %c0_i32_0 : i32, i32, i32
  }
}

</mosaic_0001>

<bundles_post_ra>
// kernel: tpu_custom_call.1
= control target key start
LH: loop header
LB: loop body
LE: loop exit
PB: predicated region body
PF: predicated region fallthrough
CT: control target
= control target key end

     0   :  { %s562_s12 = smov [#allocation4]   ;;  %s713_s0 = inlined_call_operand.hbm [shape: f32[3], index: 0, kind: input, shape index: {}]   ;;  %s714_s1 = inlined_call_operand.hbm [shape: f32[2,16,256], index: 1, kind: input, shape index: {}]   ;;  %s715_s2 = inlined_call_operand.hbm [shape: f32[2,1,16], index: 2, kind: output, shape index: {}]  }
   0x1   :  { %s8_s11 = sshll.u32 %s713_s0, 4  ;;  %s9_s11 = int_to_ptr.hbm [resolvable:$true] %s8_s11 }
   0x2   :  { %11 = dma.hbm_to_smem %s9_s11, 16, %s562_s12, [#allocation3] }
   0x3   :  { %528 = dma.done.wait [#allocation3], 16 }
   0x4   :  { %529 = vsyncadd [#allocation3], 4294967280 }
   0x5   :  { %14 = sfence }
   0x6   :  { %15 = vsyncpa [#allocation6], 0 }
   0x7   :  { %17 = vsyncpa [#allocation6 + $0x1], 0 }
   0x8   :  { %18 = vsyncpa [#allocation7], 0 }
   0x9   :  { %20 = vsyncpa [#allocation7 + $0x1], 0  ;;  %s587_s13 = smov 0   ;;  %s589_s14 = smov 0  }
   0xa   :  { %s591_s15 = smov 0   ;;  %s593_s16 = smov 0  }
   0xb   :  { %s595_s17 = smov 0   ;;  %s597_s0 = smov 0  }
   0xc LB: > { %s344_s18 = sadd.s32 4294967295, %s560_s0   ;;  %s345_s19 = sadd.s32 4294967294, %s560_s0   ;;  %s560_s0 = sphi %s597_s0, %s26_s0   ;;  %s556_s17 = sphi %s595_s17, %s724_s17   ;;  %s552_s16 = sphi %s593_s16, %s723_s16   ;;  %s548_s15 = sphi %s591_s15, %s722_s15   ;;  %s544_s14 = sphi %s589_s14, %s721_s14   ;;  %s540_s13 = sphi %s587_s13, %s720_s13  }
   0xd   : > { %s38_s20 = sadd.s32 1, %s556_s17  ;;  %s47_s21 = sadd.s32 1, %s548_s15 }
   0xe   : > { %p40_p0 = scmp.ge.s32.totalorder %s38_s20, 2  ;;  %p54_p1 = scmp.ne.s32.totalorder %s548_s15, %s544_s14 }
   0xf   : > { %p55_p2 = scmp.eq.s32.totalorder %s560_s0, 0  ;;  %p60_p3 = scmp.ne.s32.totalorder %s544_s14, %s540_s13 }
  0x10   : > { %s726_s20 = smov (%p40_p0, %s38_s20), 0  ;;  %p61_p5 = scmp.eq.s32.totalorder %s344_s18, 0 }
  0x11   : > { %p628_p4 = por %p55_p2, %p54_p1  ;;  %s42_s23 = ssub.s32 %s556_s17, %s726_s20 }
  0x12   : > { %p84_p6 = scmp.eq.s32.totalorder %s344_s18, 1  ;;  %p45_p7 = scmp.eq.s32.totalorder %s42_s23, 0 }
  0x13   : > { %p634_p8 = por %p61_p5, %p60_p3  ;;  %p90_p10 = scmp.eq.s32.totalorder %s345_s19, 1 }
  0x14   : > { %p638_p9 = por %p84_p6, %p54_p1  ;;  %p347_p12 = scmp.ge.s32.totalorder %s560_s0, 2 }
  0x15   : > { %s643_s26 = scalar_select %p45_p7, %s548_s15, %s47_s21  }
  0x16   : > { %p645_p11 = por %p90_p10, %p60_p3  ;;  %p371_p13 = scmp.lt.s32.totalorder %s560_s0, 2 }
  0x17   : > { %s110_s28 = sand.u32 1, %s548_s15   ;;  %s358_s30 = sshll.u32 %s556_s17, 5 }
  0x18   : > { %s348_s29 = sshll.u32 %s110_s28, 5  ;;  %s121_s5 = scalar_lea.hbm %s714_s1, %s358_s30 }
  0x19   : > { %s114_s6 = scalar_lea.vmem [#allocation5], %s348_s29  ;;  %s122_s8 = sshll.u32 %s121_s5, 4  ;;  %s123_s8 = int_to_ptr.hbm [resolvable:$true] %s122_s8 }
  0x1a   : > { %s124_s7 = sshll.u32 %s114_s6, 4  ;;  %p364_p0 = pnand %p371_p13, %p628_p4  ;;  %s125_s7 = int_to_ptr.vmem [resolvable:$true] %s124_s7 }
  0x1b   : > { %p351_p1 = scmp.ge.s32.totalorder %s560_s0, 1  ;;  %s111_s9 = scalar_lea.sflag [#allocation6], %s110_s28 }
  0x1c   : > { %s563_s10 = smov 256   ;;  %s564_s11 = smov 16  }
  0x1d   : > { %366 = dma.hbm_to_vmem [thread:$0]  (!%p364_p0), %s123_s8, 512, %s125_s7, %s111_s9, %s563_s10, %s563_s10, %s564_s11  }
  0x1e   : > { %p132_p2 = scmp.lt.s32.totalorder %s560_s0, 3 }
  0x20   : > { %p133_p3 = pnand %p351_p1, %p132_p2 }
  0x21   : > { %s661_s12 = sand.u32 (!%p133_p3), 1, %s544_s14  }
  0x22   : > { %136 = sbr.rel (%p133_p3) target bundleno = 433 (0x1b1), region = 24  ;;  %s352_s18 = sshll.u32 (!%p133_p3), %s661_s12, 5 }
  0x23   : > { %s139_s19 = scalar_lea.sflag (!%p133_p3), [#allocation6], %s661_s12  ;;  %s142_s21 = scalar_lea.vmem (!%p133_p3), [#allocation5], %s352_s18 }
  0x27   : > { %531 = dma.done.wait (%p634_p8), %s139_s19, 512  }
  0x28   : > { %533 = vsyncadd (%p634_p8), %s139_s19, 4294966784  ;;  %vm166_vm0 = vcmask 7168   ;;  %v565_v0 = vmov 0.0   ;;  %v169_v1 = vld [vmem:[%s142_s21] sm:$0xff]  ;;  %v170_v2 = vld [vmem:[%s142_s21 + $0x8] sm:$0xff]  ;;  %v566_v7 = vmov 0   ;;  %v201_v18 = vlaneseq  ;;  %s263_s4 = scalar_lea.hbm %s715_s2, %s552_s16 }
  0x29   : > { %167 = vst.msk [vmem:[#allocation2] sm:$0xff] %vm166_vm0, %v565_v0  ;;  %v175_v3 = vadd.f32 %v170_v2, %v169_v1  ;;  %v171_v4 = vld [vmem:[%s142_s21 + $0x10] sm:$0xff]  ;;  %v172_v5 = vld [vmem:[%s142_s21 + $0x18] sm:$0xff]  ;;  %428 = vset.pattern.permute.xlu1 %v566_v7  ;;  %429 = vset.pattern.permute.xlu0 %v566_v7  ;;  %s353_s22 = sld [smem:[#allocation4 + $0x1]]  ;;  %vm207_vm1 = vcmask 138312   ;;  %vm211_vm2 = vcmask 138240  }
  0x2a   : > { %168 = vst.msk [vmem:[#allocation2 + $0x8] sm:$0xff] %vm166_vm0, %v565_v0  ;;  %v178_v6 = vadd.f32 %v172_v5, %v171_v4  ;;  %v202_v20 = vand.u32 127, %v201_v18  ;;  %s354_s23 = sld [smem:[#allocation4 + $0x2]]  ;;  %s567_s24 = smov 127   ;;  %vm252_vm6 = vcmask 122880  }
  0x2b   : > { %176 = vadd.xlane.f32.xlu0 %v175_v3  ;;  %s568_s28 = smov 126   ;;  %s213_s29 = sld [smem:[#allocation4]] }
  0x2c   : > { %v203_v21 = vadd.s32 4294967295, %v202_v20  ;;  %v205_v22 = vadd.s32 4294967287, %v202_v20  ;;  %s160_s5 = scalar_lea.vmem [#allocation8], %s661_s12  ;;  %s267_s7 = sshll.u32 %s263_s4, 4  ;;  %s268_s7 = int_to_ptr.hbm [resolvable:$true] %s267_s7 }
  0x2d   : > { %s265_s6 = sshll.u32 %s160_s5, 4  ;;  %s255_s16 = scalar_lea.sflag [#allocation7], %s661_s12  ;;  %s266_s6 = int_to_ptr.vmem [resolvable:$true] %s265_s6 }
  0x2e   : > { %s490_s8 = sshra.s32 %s268_s7, 4  ;;  %s496_s18 = scalar_lea.hbm %s715_s2, 2  ;;  %s491_s8 = int_to_ptr.hbm [resolvable:$true] %s490_s8 }
  0x2f   : > { %v218_v27 = vstv %s353_s22  ;;  %s492_s9 = scalar_lea.hbm %s491_s8, 1  ;;  %p497_p7 = scmp.lt.s32.totalorder %s491_s8, %s715_s2 }
  0x30   : > { %v173_v8 = vld [vmem:[#allocation2] sm:$0xff]  ;;  %v226_v31 = vstv %s354_s23  ;;  %p493_p4 = scmp.ne.s32.totalorder %s491_s8, %s492_s9  ;;  %p498_p8 = scmp.lt.s32.totalorder %s496_s18, %s492_s9 }
  0x31   : > { %v174_v11 = vld [vmem:[#allocation2 + $0x8] sm:$0xff]  ;;  %v214_v34 = vstv %s213_s29 }
  0x32   : > { %p494_p5 = pnand %p493_p4, %p638_p9  ;;  %p499_p10 = por %p498_p8, %p497_p7 }
  0x33   : > { %179 = vadd.xlane.f32.xlu0 %v178_v6 }
  0x34   : > { %p495_p6 = pneg %p494_p5 }
  0x36   : > { %p500_p13 = pnand %p499_p10, %p495_p6 }
  0x9e   : > { %v177_v9 = vpop.xlane.xlu0 %176 }
  0x9f   : > { %v181_v10 = vadd.f32 %v177_v9, %v173_v8 }
  0xa1   : > { %184 = vst.msk [vmem:[#allocation2] sm:$0xff] %vm166_vm0, %v181_v10 }
  0xa6   : > { %v180_v12 = vpop.xlane.xlu0 %179 }
  0xa7   : > { %v182_v13 = vadd.f32 %v180_v12, %v174_v11 }
  0xa8   : > { %v189_v14 = vld [vmem:[#allocation2] sm:$0xff] }
  0xa9   : > { %185 = vst.msk [vmem:[#allocation2 + $0x8] sm:$0xff] %vm166_vm0, %v182_v13  ;;  %v191_v15 = vmul.f32 0.00390625, %v189_v14 }
  0xab   : > { %196 = vperm.xlu1 %428, %v191_v15  }
  0xb0   : > { %v190_v16 = vld [vmem:[#allocation2 + $0x8] sm:$0xff] }
  0xb1   : > { %v192_v17 = vmul.f32 0.00390625, %v190_v16 }
  0xb3   : > { %199 = vperm.xlu1 %428, %v192_v17  }
 0x11d   : > { %v197_v19 = vpop.permute.xlu1 %196 }
 0x11e   : > { %v204_v24 = vperm.slane %v197_v19, %v203_v21 }
 0x125   : > { %v200_v23 = vpop.permute.xlu1 %199 }
 0x126   : > { %v206_v25 = vperm.slane %v200_v23, %v205_v22 }
 0x128   : > { %v208_v26 = vsel %vm207_vm1, %v206_v25, %v204_v24 }
 0x129   : > { %v210_v28 = vsel %vm166_vm0, 0.0, %v208_v26 }
 0x12a   : > { %v212_v29 = vsel %vm211_vm2, %v210_v28, 0.0 }
 0x12b   : > { %v219_v30 = vmul.f32 %v218_v27, %v212_v29  ;;  %v227_v32 = vmul.f32 %v226_v31, %v212_v29  ;;  %v215_v35 = vmul.f32 %v214_v34, %v212_v29 }
 0x12d   : > { %221 = vrot.lane.b32.xlu2 %v219_v30, %s567_s24 }
 0x135   : > { %229 = vrot.lane.b32.xlu2 %v227_v32, %s568_s28 }
 0x187   : > { %v222_v33 = vpop.permute.xlu2 %221 }
 0x188   : > { %v224_v36 = vadd.f32 %v222_v33, %v215_v35 }
 0x18f   : > { %v230_v37 = vpop.permute.xlu2 %229 }
 0x190   : > { %v232_v38 = vadd.f32 %v230_v37, %v224_v36 }
 0x192   : > { %v355_v39 = vmul.f32 -1.442695, %v232_v38 }
 0x194   : > { %430 = vpow2.f32 %v355_v39 }
 0x19a   : > { %v431_v40 = vpop.eup %430 }
 0x19b   : > { %v236_v41 = vadd.f32 1.0, %v431_v40 }
 0x19d   : > { %432 = vrcp.f32 %v236_v41  ;;  %v248_v45 = vand.u32 2147483648, %v236_v41  ;;  %v246_v47 = vand.u32 2147483647, %v236_v41  ;;  %vm242_vm4 = vweird.f32 %v236_v41 }
 0x19f   : > { %v249_v49 = vor.u32 1.1754944e-38, %v248_v45  ;;  %vm247_vm7 = vcmp.eq.f32.partialorder %v246_v47, 8.507059e+37 }
 0x1a3   : > { %v433_v42 = vpop.eup %432 }
 0x1a4   : > { %v238_v43 = vmul.f32 %v433_v42, %v236_v41  ;;  %vm243_vm3 = vweird.f32 %v433_v42 }
 0x1a5   : > { %vm244_vm5 = vmor %vm242_vm4, %vm243_vm3 }
 0x1a6   : > { %v239_v44 = vsub.f32 1.0, %v238_v43 }
 0x1a8   : > { %v240_v46 = vmul.f32 %v433_v42, %v239_v44 }
 0x1aa   : > { %v241_v48 = vadd.f32 %v433_v42, %v240_v46 }
 0x1ac   : > { %v245_v50 = vsel %vm244_vm5, %v433_v42, %v241_v48 }
 0x1ad   : > { %v250_v51 = vsel %vm247_vm7, %v249_v49, %v245_v50 }
 0x1ae   : > { %253 = vst.msk [vmem:[%s160_s5] sm:$0x1] %vm252_vm6, %v250_v51 }
 0x1af   : > { %503 = shalt.err (!%p500_p13)
}
 0x1b0   : > { %361 = dma.vmem_to_hbm [thread:$0]  (%p638_p9), %s266_s6, 16, %s268_s7, %s255_s16  }
 0x1b1 PF: > { %s279_s12 = sand.u32 1, %s540_s13   ;;  %p368_p0 = pnand %p347_p12, %p645_p11 }
 0x1b2   : > { %s280_s22 = scalar_lea.sflag [#allocation7], %s279_s12 }
 0x1b3   : > { %p369_p1 = pneg %p368_p0 }
 0x1b5   : > { %535 = dma.done.wait (%p369_p1), %s280_s22, 16  }
 0x1b6   : > { %537 = vsyncadd (%p369_p1), %s280_s22, 4294967280  ;;  %s26_s0 = sadd.s32 1, %s560_s0   ;;  %s720_s13 = smov %s544_s14 }
 0x1b7   : > { %p23_p2 = scmp.ge.s32.totalorder %s26_s0, 4   ;;  %s721_s14 = smov %s548_s15 }
 0x1b8   : > { %s722_s15 = smov %s643_s26  ;;  %s723_s16 = smov %s556_s17 }
 0x1b9   : > { %s724_s17 = smov %s726_s20  ;;  %25 = sbr.rel (!%p23_p2) target bundleno = 12 (0xc), region = 77 }
 0x1be   :  { %285 = vsyncpa [#allocation6], 1 }
 0x1bf   :  { %287 = vsyncpa [#allocation6 + $0x1], 1 }
 0x1c0   :  { %288 = vsyncpa [#allocation7], 1 }
 0x1c1   :  { %290 = vsyncpa [#allocation7 + $0x1], 1 }

</bundles_post_ra>
